<compile_context>
chip_gen: v7x
topology: tpu7x:2x2x1
jax: 0.10.0
libtpu: 0.0.40
codegen_flags: <defaults>
</compile_context>

<pallas_src>
import numpy as np
import jax
import jax.numpy as jnp
from jax.experimental import pallas as pl
from jax.experimental.pallas import tpu as pltpu

END_TURN = "END_TURN"

_LANE = 128          # lane width: move axis is padded up to a multiple of this
_TAIL = 8            # extra K rows: [b_net sel, b_end sel, pad(-inf) sel, 0...]
_NEG = -1e30         # effective -inf for padding logits


# --------------------------------------------------------------------------- #
# kernel
# --------------------------------------------------------------------------- #
def _pairwise_policy_kernel(x_ref, r_ref, w_ref, b_ref, pol_ref):
    """Fused PairwisePolicy forward: per-cell scores -> one MXU dot -> softmax.

    x_ref   : (B, N, E)   bf16/f32 VMEM  flattened board embedding
    r_ref   : (K, M_pad)  f32  VMEM  host-built selection matrix (cached per
                                     move set), K = 3N + _TAIL:
                 rows [0 , N )  : one-hot of the from-cell of each move
                 rows [N , 2N)  : one-hot of the to-cell of each move
                 rows [2N, 3N)  : 1/N on END_TURN columns (mean pool on the MXU)
                 row  3N        : 1 on normal-move columns  (selects b_net)
                 row  3N+1      : 1 on END_TURN columns     (selects b_end)
                 row  3N+2      : 1 on padding columns      (selects -inf)
    w_ref   : (3, E)      f32  VMEM  stacked [w_from; w_to; w_end]
    b_ref   : (2,)        f32  SMEM  [b_net, b_end]
    pol_ref : (B, M_pad)  f32  VMEM  softmax probabilities (padding cols == 0)
    """
    B, N, E = x_ref.shape
    K, M_pad = r_ref.shape

    x = x_ref[...].astype(jnp.float32)                    # bf16 upcast in-kernel

    # per-cell scores: VPU broadcast-multiply + lane reduce (E is the lane axis)
    w_f = w_ref[0:1, :]
    w_t = w_ref[1:2, :]
    w_e = w_ref[2:3, :]
    s_from = jnp.sum(x * w_f[:, None, :], axis=-1)        # (B, N)
    s_to   = jnp.sum(x * w_t[:, None, :], axis=-1)        # (B, N)
    s_end  = jnp.sum(x * w_e[:, None, :], axis=-1)        # (B, N) per-cell end

    # scalar tail [b_net, b_end, -inf, 0, ...] broadcast over the batch; the
    # matching rows of R pick the right value per move column, so the bias add,
    # the END_TURN splice and the padding mask all ride the single matmul.
    t_iota = jax.lax.broadcasted_iota(jnp.int32, (B, K - 3 * N), 1)
    tail = jnp.where(t_iota == 0, b_ref[0],
           jnp.where(t_iota == 1, b_ref[1],
           jnp.where(t_iota == 2, jnp.float32(_NEG), jnp.float32(0.0))))

    s_ext = jnp.concatenate([s_from, s_to, s_end, tail], axis=-1)   # (B, K)

    # single MXU contraction: move gather + END_TURN mean-pool + biases + pads
    logits = jnp.dot(s_ext, r_ref[...],
                     preferred_element_type=jnp.float32)            # (B, M_pad)

    # softmax over the lane-dense move axis; exact normalization so the output
    # is a true probability distribution (pad columns come out exactly 0).
    mx = jnp.max(logits, axis=-1, keepdims=True)
    ex = jnp.exp(logits - mx)
    pol_ref[...] = ex / jnp.sum(ex, axis=-1, keepdims=True)


# --------------------------------------------------------------------------- #
# host-side move-set preprocessing (done ONCE per move set, result is cached)
# --------------------------------------------------------------------------- #
def build_move_selector(moves, spatial, m_pad=None):
    """Build the (K, M_pad) selection matrix for a move list.

    Pure move structure (0 / 1 / 1/N entries) -- parameters never enter, so the
    result can be cached and reused across parameter updates.  Returns
    (device array selector, M)."""
    moves = list(moves)
    M = len(moves)
    N = int(np.prod(spatial))
    if m_pad is None:
        m_pad = max(_LANE, ((M + _LANE - 1) // _LANE) * _LANE)
    K = 3 * N + _TAIL
    R = np.zeros((K, m_pad), np.float32)
    R[3 * N + 2, M:] = 1.0                                # padding cols -> -inf
    for m, mv in enumerate(moves):
        if isinstance(mv, str) and mv == END_TURN:
            R[2 * N:3 * N, m] = 1.0 / N                   # mean pool via the MXU
            R[3 * N + 1, m] = 1.0                         # selects b_end
        else:
            f, t = mv
            R[int(np.ravel_multi_index(tuple(f), spatial)), m] = 1.0
            R[N + int(np.ravel_multi_index(tuple(t), spatial)), m] = 1.0
            R[3 * N, m] = 1.0                             # selects b_net
    return jnp.asarray(R), M


# --------------------------------------------------------------------------- #
# forward (hot path) + convenience cached entry point
# --------------------------------------------------------------------------- #
def pairwise_policy_forward(X, selector, params):
    """Hot path.  X: (B, D1, ..., Dk, E) channels-last, bf16 or f32;
    selector from build_move_selector.  Returns padded (B, M_pad)
    probabilities (padding columns are exactly 0); slice [:, :M] downstream."""
    B, E = X.shape[0], X.shape[-1]
    spatial = X.shape[1:-1]
    N = int(np.prod(spatial))
    K, M_pad = selector.shape
    assert K == 3 * N + _TAIL, "selector was built for a different board shape"
    Xf = X.reshape(B, N, E)

    # No grid: whole-array VMEM residency (~100 KB).  For self-play batches,
    # tile over B with a "parallel" grid axis (v7x: 2 TensorCores), keep the
    # B tile a multiple of 8, and size double-buffered blocks for v7x's
    # 64 MiB VMEM (set vmem_limit_bytes in pltpu.CompilerParams).
    return pl.pallas_call(
        _pairwise_policy_kernel,
        out_shape=jax.ShapeDtypeStruct((B, M_pad), jnp.float32),
        in_specs=[
            pl.BlockSpec(memory_space=pltpu.MemorySpace.VMEM),   # Xf
            pl.BlockSpec(memory_space=pltpu.MemorySpace.VMEM),   # selector R
            pl.BlockSpec(memory_space=pltpu.MemorySpace.VMEM),   # W3 (3, E)
            pl.BlockSpec(memory_space=pltpu.MemorySpace.SMEM),   # biases (2,)
        ],
        out_specs=pl.BlockSpec(memory_space=pltpu.MemorySpace.VMEM),
    )(Xf, selector, params["W3"], params["b"])


_selector_cache = {}


def pairwise_policy(X, moves, params):
    """Module-style entry point: (X, moves) -> (B, M) distribution.  The
    per-move-set selection matrix is cached, so repeated calls with the same
    move list do no host-side index building and no extra H2D uploads."""
    moves = list(moves)
    if len(moves) == 0:
        return None
    spatial = tuple(X.shape[1:-1])
    key = (tuple(mv if isinstance(mv, str) else (tuple(mv[0]), tuple(mv[1]))
                 for mv in moves), spatial)
    if key not in _selector_cache:
        _selector_cache[key] = build_move_selector(moves, spatial)
    selector, M = _selector_cache[key]
    return pairwise_policy_forward(X, selector, params)[:, :M]


# --------------------------------------------------------------------------- #
# parameters + pure-JAX reference
# --------------------------------------------------------------------------- #
def init_params(key, embedding_dim):
    k1, k2 = jax.random.split(key)
    scale = 1.0 / np.sqrt(embedding_dim)
    w_move = jax.random.normal(k1, (2, embedding_dim), jnp.float32) * scale
    w_end = jax.random.normal(k2, (1, embedding_dim), jnp.float32) * scale
    return {
        # rows 0/1: Linear(2E->1) weight of `network`, split as [w_from; w_to];
        # row 2:    no_move_output Linear(E->1) weight
        "W3": jnp.concatenate([w_move, w_end], axis=0),      # (3, E)
        # [b_net, b_end]
        "b": jnp.asarray([0.1, -0.2], jnp.float32),
    }


def pairwise_policy_reference(X, moves, params):
    """Pure-JAX reference of the same forward (for checking)."""
    X = jnp.asarray(X, jnp.float32)
    B, E = X.shape[0], X.shape[-1]
    spatial = X.shape[1:-1]
    N = int(np.prod(spatial))
    Xf = X.reshape(B, N, E)
    w_f, w_t, w_e = params["W3"][0], params["W3"][1], params["W3"][2]
    b_net, b_end = params["b"][0], params["b"][1]
    pooled = jnp.mean(Xf, axis=1)
    end_score = pooled @ w_e + b_end                         # (B,)
    cols = []
    for mv in moves:
        if isinstance(mv, str) and mv == END_TURN:
            cols.append(end_score)
        else:
            f, t = mv
            fidx = int(np.ravel_multi_index(tuple(f), spatial))
            tidx = int(np.ravel_multi_index(tuple(t), spatial))
            cols.append(Xf[:, fidx, :] @ w_f + Xf[:, tidx, :] @ w_t + b_net)
    logits = jnp.stack(cols, axis=1)                         # (B, M)
    return jax.nn.softmax(logits, axis=-1)


if __name__ == "__main__":
    key = jax.random.PRNGKey(0)
    kx, kp = jax.random.split(key)

    # Small shapes consistent with the module: batch=2, board 8x8, embedding=32.
    B, D1, D2, E = 2, 8, 8, 32
    X32 = jax.random.normal(kx, (B, D1, D2, E), jnp.float32)
    X = X32.astype(jnp.bfloat16)          # kernel accepts bf16; upcast in-kernel

    # 7 board moves + END_TURN -> M = 8
    moves = [
        ((0, 0), (1, 0)),
        ((0, 1), (2, 2)),
        ((3, 3), (4, 4)),
        ((7, 7), (6, 5)),
        ((1, 4), (3, 4)),
        ((5, 2), (5, 7)),
        ((6, 0), (4, 1)),
        END_TURN,
    ]
    params = init_params(kp, E)

    # hot path: selector built once per move set, forward returns padded output
    selector, M = build_move_selector(moves, (D1, D2))
    probs_pad = pairwise_policy_forward(X, selector, params)      # (B, M_pad)
    jax.block_until_ready(probs_pad)

    policy = probs_pad[:, :M]                                     # consumer slice
    assert policy.shape == (B, len(moves)), policy.shape

    # reference on the same bf16-rounded input (fair comparison)
    ref = pairwise_policy_reference(X.astype(jnp.float32), moves, params)
    pol_np = np.asarray(policy)
    ref_np = np.asarray(ref)
    # loose tolerance only to cover possible bf16 MXU passes for the f32 dot
    assert np.allclose(pol_np, ref_np, atol=1e-2), float(np.abs(pol_np - ref_np).max())
    # exact softmax normalization and zeroed padding columns
    assert np.allclose(pol_np.sum(axis=-1), 1.0, atol=1e-5)
    assert np.allclose(np.asarray(probs_pad)[:, M:], 0.0, atol=1e-20)

    # cached convenience wrapper agrees with the explicit hot path
    policy2 = pairwise_policy(X, moves, params)
    jax.block_until_ready(policy2)
    assert np.allclose(np.asarray(policy2), pol_np, atol=1e-6)

    print("KERNEL_OK")
</pallas_src>

<mosaic_0001>
module attributes {stable_mosaic.version = 11 : i64} {
  func.func @_pairwise_policy_kernel(%arg0: memref<2x64x32xbf16, #tpu.memory_space<vmem>>, %arg1: memref<200x128xf32, #tpu.memory_space<vmem>>, %arg2: memref<3x32xf32, #tpu.memory_space<vmem>>, %arg3: memref<2xf32, #tpu.memory_space<smem>>, %arg4: memref<2x128xf32, #tpu.memory_space<vmem>>) attributes {dimension_semantics = [], scalar_prefetch = 0 : i64, scratch_operands = 0 : i64, tpu.core_type = #tpu.core_type<tc>} {
    %c0 = arith.constant 0 : index
    %c0_0 = arith.constant 0 : index
    %c0_1 = arith.constant 0 : index
    %0 = vector.load %arg0[%c0, %c0_0, %c0_1] : memref<2x64x32xbf16, #tpu.memory_space<vmem>>, vector<2x64x32xbf16>
    %1 = arith.extf %0 : vector<2x64x32xbf16> to vector<2x64x32xf32>
    %c0_2 = arith.constant 0 : index
    %c0_3 = arith.constant 0 : index
    %2 = vector.load %arg2[%c0_2, %c0_3] : memref<3x32xf32, #tpu.memory_space<vmem>>, vector<1x32xf32>
    %c1 = arith.constant 1 : index
    %c0_4 = arith.constant 0 : index
    %3 = vector.load %arg2[%c1, %c0_4] : memref<3x32xf32, #tpu.memory_space<vmem>>, vector<1x32xf32>
    %c2 = arith.constant 2 : index
    %c0_5 = arith.constant 0 : index
    %4 = vector.load %arg2[%c2, %c0_5] : memref<3x32xf32, #tpu.memory_space<vmem>>, vector<1x32xf32>
    %5 = vector.shape_cast %2 : vector<1x32xf32> to vector<1x1x32xf32>
    %6 = vector.broadcast %5 : vector<1x1x32xf32> to vector<2x64x32xf32>
    %7 = arith.mulf %1, %6 : vector<2x64x32xf32>
    %cst = arith.constant dense<0.000000e+00> : vector<2x64xf32>
    %8 = vector.multi_reduction <add>, %7, %cst [2] : vector<2x64x32xf32> to vector<2x64xf32>
    %9 = vector.shape_cast %3 : vector<1x32xf32> to vector<1x1x32xf32>
    %10 = vector.broadcast %9 : vector<1x1x32xf32> to vector<2x64x32xf32>
    %11 = arith.mulf %1, %10 : vector<2x64x32xf32>
    %cst_6 = arith.constant dense<0.000000e+00> : vector<2x64xf32>
    %12 = vector.multi_reduction <add>, %11, %cst_6 [2] : vector<2x64x32xf32> to vector<2x64xf32>
    %13 = vector.shape_cast %4 : vector<1x32xf32> to vector<1x1x32xf32>
    %14 = vector.broadcast %13 : vector<1x1x32xf32> to vector<2x64x32xf32>
    %15 = arith.mulf %1, %14 : vector<2x64x32xf32>
    %cst_7 = arith.constant dense<0.000000e+00> : vector<2x64xf32>
    %16 = vector.multi_reduction <add>, %15, %cst_7 [2] : vector<2x64x32xf32> to vector<2x64xf32>
    %17 = tpu.iota {dimensions = array<i32: 1>} : vector<2x8xi32>
    %c0_i32 = arith.constant 0 : i32
    %18 = vector.broadcast %c0_i32 : i32 to vector<2x8xi32>
    %19 = arith.cmpi eq, %17, %18 : vector<2x8xi32>
    %c0_8 = arith.constant 0 : index
    %20 = memref.load %arg3[%c0_8] : memref<2xf32, #tpu.memory_space<smem>>
    %c1_i32 = arith.constant 1 : i32
    %21 = vector.broadcast %c1_i32 : i32 to vector<2x8xi32>
    %22 = arith.cmpi eq, %17, %21 : vector<2x8xi32>
    %c1_9 = arith.constant 1 : index
    %23 = memref.load %arg3[%c1_9] : memref<2xf32, #tpu.memory_space<smem>>
    %c2_i32 = arith.constant 2 : i32
    %24 = vector.broadcast %c2_i32 : i32 to vector<2x8xi32>
    %25 = arith.cmpi eq, %17, %24 : vector<2x8xi32>
    %cst_10 = arith.constant -1.000000e+30 : f32
    %cst_11 = arith.constant 0.000000e+00 : f32
    %26 = vector.broadcast %cst_10 : f32 to vector<2x8xf32>
    %27 = vector.broadcast %cst_11 : f32 to vector<2x8xf32>
    %28 = arith.select %25, %26, %27 : vector<2x8xi1>, vector<2x8xf32>
    %29 = vector.broadcast %23 : f32 to vector<2x8xf32>
    %30 = arith.select %22, %29, %28 : vector<2x8xi1>, vector<2x8xf32>
    %31 = vector.broadcast %20 : f32 to vector<2x8xf32>
    %32 = arith.select %19, %31, %30 : vector<2x8xi1>, vector<2x8xf32>
    %33 = tpu.concatenate %8, %12, %16, %32 in 1 : vector<2x64xf32>, vector<2x64xf32>, vector<2x64xf32>, vector<2x8xf32> -> vector<2x200xf32>
    %c0_12 = arith.constant 0 : index
    %c0_13 = arith.constant 0 : index
    %34 = vector.load %arg1[%c0_12, %c0_13] : memref<200x128xf32, #tpu.memory_space<vmem>>, vector<200x128xf32>
    %cst_14 = arith.constant dense<0.000000e+00> : vector<2x128xf32>
    %35 = tpu.matmul %33, %34, %cst_14 {dimension_numbers = #tpu.dot_dimension_numbers<[1], [0], [0], [1], [0, 0, 1, 1], [], []>} : vector<2x200xf32>, vector<200x128xf32>, vector<2x128xf32> -> vector<2x128xf32>
    %cst_15 = arith.constant dense<0xFF800000> : vector<2xf32>
    %36 = vector.multi_reduction <maximumf>, %35, %cst_15 [1] : vector<2x128xf32> to vector<2xf32>
    %37 = vector.shape_cast %36 : vector<2xf32> to vector<2x1xf32>
    %38 = vector.broadcast %37 : vector<2x1xf32> to vector<2x128xf32>
    %39 = arith.subf %35, %38 : vector<2x128xf32>
    %40 = math.exp %39 : vector<2x128xf32>
    %cst_16 = arith.constant dense<0.000000e+00> : vector<2xf32>
    %41 = vector.multi_reduction <add>, %40, %cst_16 [1] : vector<2x128xf32> to vector<2xf32>
    %42 = vector.shape_cast %41 : vector<2xf32> to vector<2x1xf32>
    %43 = vector.broadcast %42 : vector<2x1xf32> to vector<2x128xf32>
    %44 = arith.divf %40, %43 : vector<2x128xf32>
    %c0_17 = arith.constant 0 : index
    %c0_18 = arith.constant 0 : index
    %45 = vector.load %arg4[%c0_17, %c0_18] : memref<2x128xf32, #tpu.memory_space<vmem>>, vector<2x128xf32>
    tpu.vector_store %arg4[%c0_17, %c0_18], %44 {strides = array<i32>} : memref<2x128xf32, #tpu.memory_space<vmem>>, vector<2x128xf32>,
    return
  }
}

</mosaic_0001>

<bundles_post_ra>
// kernel: tpu_custom_call.1
= control target key start
LH: loop header
LB: loop body
LE: loop exit
PB: predicated region body
PF: predicated region fallthrough
CT: control target
= control target key end

     0   :  { %9 = vsyncpa [#allocation3], 0  ;;  %s1197_s0 = inlined_call_operand.vmem [shape: bf16[2,64,32], index: 0, kind: input, shape index: {}]   ;;  %s1198_s1 = inlined_call_operand.hbm [shape: f32[200,128], index: 1, kind: input, shape index: {}]   ;;  %s1199_s2 = inlined_call_operand.vmem [shape: f32[3,32], index: 2, kind: input, shape index: {}]   ;;  %s1200_s3 = inlined_call_operand.vmem [shape: f32[2], index: 3, kind: input, shape index: {}]   ;;  %s1201_s4 = inlined_call_operand.hbm [shape: f32[2,128], index: 4, kind: output, shape index: {}]  }
   0x1   :  { %10 = vsyncpa [#allocation5], 0 }
   0x2   :  { %11 = vsyncpa [#allocation4], 0  ;;  %s904_s15 = smov [#allocation2]   ;;  %s34_s19 = sshll.u32 %s1200_s3, 4  ;;  %s35_s19 = int_to_ptr.vmem [resolvable:$true] %s34_s19 }
   0x3   :  { %s19_s16 = sshll.u32 %s904_s15, 4  ;;  %s842_s22 = scalar_lea.hbm %s1198_s1, 3200  ;;  %s20_s16 = int_to_ptr.vmem [resolvable:$true] %s19_s16 }
   0x4   :  { %p843_p0 = scmp.ne.s32.totalorder %s1198_s1, %s842_s22  ;;  %p846_p1 = scmp.lt.u32.totalorder %s842_s22, %s1198_s1 }
   0x6   :  { %p848_p2 = pnand %p846_p1, %p843_p0 }
   0x8   :  { %851 = shalt.err (!%p848_p2)
}
   0x9   :  { %s852_s27 = scalar_lea.vmem %s20_s16, 3200  ;;  %p857_p4 = scmp.lt.s32.totalorder %s20_s16, %s20_s16 }
   0xa   :  { %p853_p3 = scmp.ne.s32.totalorder %s20_s16, %s852_s27  ;;  %p858_p5 = scmp.lt.s32.totalorder %s852_s27, %s852_s27 }
   0xc   :  { %p859_p6 = por %p858_p5, %p857_p4 }
   0xe   :  { %p860_p7 = pnand %p859_p6, %p853_p3 }
  0x10   :  { %863 = shalt.err (!%p860_p7)
}
  0x11   :  { %s905_s3 = smov 128   ;;  %s906_s28 = smov 8  }
  0x12   :  { %25 = dma.hbm_to_vmem [thread:$0]  %s1198_s1, 3200, %s20_s16, [#allocation3], %s905_s3, %s905_s3, %s906_s28  }
  0x13   :  { %s864_s5 = scalar_lea.vmem %s35_s19, 16  ;;  %p869_p9 = scmp.lt.s32.totalorder %s35_s19, %s35_s19 }
  0x14   :  { %p865_p8 = scmp.ne.s32.totalorder %s35_s19, %s864_s5  ;;  %p870_p10 = scmp.lt.s32.totalorder %s864_s5, %s864_s5 }
  0x16   :  { %p871_p11 = por %p870_p10, %p869_p9 }
  0x18   :  { %p872_p12 = pnand %p871_p11, %p865_p8 }
  0x1a   :  { %875 = shalt.err (!%p872_p12)
}
  0x1b   :  { %s907_s6 = smov [#allocation6]  }
  0x1c   :  { %37 = dma.vmem_to_smem %s35_s19, 16, %s907_s6, [#allocation5]  }
  0x1d   :  { %898 = dma.done.wait [#allocation3], 3200  }
  0x1e   :  { %899 = vsyncadd [#allocation3], 4294964096 }
  0x1f   :  { %900 = dma.done.wait [#allocation5], 16  }
  0x20   :  { %901 = vsyncadd [#allocation5], 4294967280 }
  0x21   :  { %44 = sfence }
  0x22   :  { %v790_v0 = vld [vmem:[%s1197_s0 + $0x20] sm:$0xff]   ;;  %vm100_vm0 = vcmask 261120   ;;  %v791_v22 = vld [vmem:[%s1197_s0 + $0x28] sm:$0xff]   ;;  %v793_v34 = vld [vmem:[%s1197_s0 + $0x38] sm:$0xff]   ;;  %s288_s27 = sld [smem:[#allocation6]]  ;;  %s910_s3 = smov 64  }
  0x23   :  { %v958_v1 = vld [vmem:[%s1199_s2 + $0x2] ss:$0 sm:$0xff]  ;;  %v773_v3 = vunpack.c.l.bf16 %v790_v0  ;;  %v774_v5 = vunpack.c.h.bf16 %v790_v0  ;;  %v970_v11 = vld [vmem:[%s1199_s2] ss:$0 sm:$0xff]  ;;  %v988_v23 = vld [vmem:[%s1199_s2 + $0x1] ss:$0 sm:$0xff]  ;;  %v777_v26 = vunpack.c.l.bf16 %v791_v22  ;;  %v785_v40 = vunpack.c.l.bf16 %v793_v34 }
  0x24   :  { %v756_v2 = vld [vmem:[%s1197_s0] sm:$0xff]   ;;  %v993_v24 = vld [vmem:[%s1197_s0 + $0x8] sm:$0xff]   ;;  %v789_v35 = vld [vmem:[%s1197_s0 + $0x18] sm:$0xff]   ;;  %v786_v42 = vunpack.c.h.bf16 %v793_v34  ;;  %vm322_vm4 = vcmask 130112   ;;  %vm434_vm5 = vcmask 654912   ;;  %vm329_vm6 = vcmask 195712  }
  0x25   :  { %v757_v4 = vunpack.c.l.bf16 %v756_v2  ;;  %v758_v6 = vunpack.c.h.bf16 %v756_v2  ;;  %v229_v7 = vmul.f32 %v773_v3, %v958_v1  ;;  %v230_v9 = vmul.f32 %v774_v5, %v958_v1  ;;  %s911_s28 = smov [#allocation7]  }
  0x26   :  { %v93_v18 = vmul.f32 %v774_v5, %v970_v11  ;;  %v92_v21 = vmul.f32 %v773_v3, %v970_v11  ;;  %v761_v30 = vunpack.c.l.bf16 %v993_v24  ;;  %v162_v31 = vmul.f32 %v774_v5, %v988_v23  ;;  %s740_s29 = sshll.u32 %s911_s28, 4  ;;  %s741_s29 = int_to_ptr.vmem [resolvable:$true] %s740_s29 }
  0x27   :  { %v221_v8 = vmul.f32 %v757_v4, %v958_v1  ;;  %v222_v10 = vmul.f32 %v758_v6, %v958_v1  ;;  %v261_v12 = vsel %vm100_vm0, %v229_v7, 0.0  ;;  %v264_v14 = vsel %vm100_vm0, %v230_v9, 0.0  ;;  %s876_s30 = scalar_lea.vmem %s741_s29, 32  ;;  %p881_p0 = scmp.lt.s32.totalorder %s741_s29, %s741_s29 }
  0x28   :  { %262 = vadd.xlane.f32.xlu1 %v261_v12  ;;  %v85_v16 = vmul.f32 %v758_v6, %v970_v11  ;;  %v84_v17 = vmul.f32 %v757_v4, %v970_v11  ;;  %v128_v25 = vsel %vm100_vm0, %v93_v18, 0.0  ;;  %v125_v27 = vsel %vm100_vm0, %v92_v21, 0.0  ;;  %p877_p13 = scmp.ne.s32.totalorder %s741_s29, %s876_s30  ;;  %p882_p1 = scmp.lt.s32.totalorder %s876_s30, %s876_s30 }
  0x29   :  { %v237_v13 = vsel %vm100_vm0, %v221_v8, 0.0  ;;  %v240_v15 = vsel %vm100_vm0, %v222_v10, 0.0  ;;  %v154_v28 = vmul.f32 %v758_v6, %v988_v23  ;;  %v153_v29 = vmul.f32 %v757_v4, %v988_v23 }
  0x2a   :  { %238 = vadd.xlane.f32.xlu0 %v237_v13  ;;  %v104_v19 = vsel %vm100_vm0, %v85_v16, 0.0  ;;  %v101_v20 = vsel %vm100_vm0, %v84_v17, 0.0  ;;  %v161_v32 = vmul.f32 %v773_v3, %v988_v23  ;;  %v231_v33 = vmul.f32 %v777_v26, %v958_v1  ;;  %p883_p2 = por %p882_p1, %p881_p0 }
  0x2b   :  { %v172_v36 = vsel %vm100_vm0, %v154_v28, 0.0  ;;  %v169_v37 = vsel %vm100_vm0, %v153_v29, 0.0  ;;  %v223_v38 = vmul.f32 %v761_v30, %v958_v1  ;;  %v94_v39 = vmul.f32 %v777_v26, %v970_v11 }
  0x2c   :  { %265 = vadd.xlane.f32.xlu1 %v264_v14  ;;  %v769_v41 = vunpack.c.l.bf16 %v789_v35  ;;  %v196_v43 = vsel %vm100_vm0, %v162_v31, 0.0  ;;  %v193_v44 = vsel %vm100_vm0, %v161_v32, 0.0  ;;  %v267_v45 = vsel %vm100_vm0, %v231_v33, 0.0  ;;  %p884_p3 = pnand %p883_p2, %p877_p13 }
  0x2d   :  { %v86_v46 = vmul.f32 %v761_v30, %v970_v11  ;;  %v243_v47 = vsel %vm100_vm0, %v223_v38, 0.0  ;;  %v235_v48 = vmul.f32 %v785_v40, %v958_v1  ;;  %v98_v50 = vmul.f32 %v785_v40, %v970_v11 }
  0x2e   :  { %241 = vadd.xlane.f32.xlu0 %v240_v15  ;;  %v227_v49 = vmul.f32 %v769_v41, %v958_v1  ;;  %v90_v51 = vmul.f32 %v769_v41, %v970_v11  ;;  %v167_v52 = vmul.f32 %v785_v40, %v988_v23  ;;  %v159_v53 = vmul.f32 %v769_v41, %v988_v23 }
  0x2f   :  { %v236_v54 = vmul.f32 %v786_v42, %v958_v1  ;;  %v1026_v55 = vsel %vm100_vm0, %v235_v48, 0.0  ;;  %v1032_v57 = vsel %vm100_vm0, %v98_v50, 0.0  ;;  %v770_v58 = vunpack.c.h.bf16 %v789_v35 }
  0x30   :  { %105 = vadd.xlane.f32.xlu1 %v104_v19  ;;  %v1029_v56 = vsel %vm100_vm0, %v227_v49, 0.0  ;;  %v1035_v59 = vsel %vm100_vm0, %v90_v51, 0.0  ;;  %v1038_v60 = vsel %vm100_vm0, %v167_v52, 0.0  ;;  %v1041_v61 = vsel %vm100_vm0, %v159_v53, 0.0 }
  0x31   :  { %v1044_v62 = vsel %vm100_vm0, %v236_v54, 0.0  ;;  %v228_v63 = vmul.f32 %v770_v58, %v958_v1  ;;  %v99_v0 = vmul.f32 %v786_v42, %v970_v11  ;;  %v91_v2 = vmul.f32 %v770_v58, %v970_v11 }
  0x32   :  { %102 = vadd.xlane.f32.xlu0 %v101_v20  ;;  %v168_v3 = vmul.f32 %v786_v42, %v988_v23  ;;  %v160_v4 = vmul.f32 %v770_v58, %v988_v23  ;;  %v163_v9 = vmul.f32 %v777_v26, %v988_v23  ;;  %v778_v10 = vunpack.c.h.bf16 %v791_v22  ;;  %v792_v26 = vld [vmem:[%s1197_s0 + $0x30] sm:$0xff]  }
  0x33   :  { %v1052_v5 = vsel %vm100_vm0, %v228_v63, 0.0  ;;  %v1055_v6 = vsel %vm100_vm0, %v99_v0, 0.0  ;;  %v1058_v7 = vsel %vm100_vm0, %v91_v2, 0.0  ;;  %v131_v13 = vsel %vm100_vm0, %v94_v39, 0.0  ;;  %v622_v2 = vld [vmem:[#allocation2] sm:$0xff] }
  0x34   :  { %129 = vadd.xlane.f32.xlu1 %v128_v25  ;;  %v1061_v8 = vsel %vm100_vm0, %v168_v3, 0.0  ;;  %v1065_v12 = vsel %vm100_vm0, %v160_v4, 0.0  ;;  %v107_v14 = vsel %vm100_vm0, %v86_v46, 0.0  ;;  %v155_v15 = vmul.f32 %v761_v30, %v988_v23  ;;  %v623_v3 = vld [vmem:[#allocation2 + $0x8] sm:$0xff] }
  0x35   :  { %v762_v16 = vunpack.c.h.bf16 %v993_v24  ;;  %v199_v17 = vsel %vm100_vm0, %v163_v9, 0.0  ;;  %v232_v19 = vmul.f32 %v778_v10, %v958_v1  ;;  %v95_v21 = vmul.f32 %v778_v10, %v970_v11 }
  0x36   :  { %126 = vadd.xlane.f32.xlu0 %v125_v27  ;;  %v175_v18 = vsel %vm100_vm0, %v155_v15, 0.0  ;;  %v788_v27 = vld [vmem:[%s1197_s0 + $0x10] sm:$0xff]   ;;  %v164_v29 = vmul.f32 %v778_v10, %v988_v23  ;;  %v781_v32 = vunpack.c.l.bf16 %v792_v26  ;;  %v795_v9 = vpack.c.bf16 %v623_v3, %v622_v2  ;;  %s753_s0 = sld [smem:[#allocation6 + $0x1]] }
  0x37   :  { %v224_v20 = vmul.f32 %v762_v16, %v958_v1  ;;  %v270_v22 = vsel %vm100_vm0, %v232_v19, 0.0  ;;  %v87_v24 = vmul.f32 %v762_v16, %v970_v11  ;;  %v134_v28 = vsel %vm100_vm0, %v95_v21, 0.0  ;;  %v628_v19 = vld [vmem:[#allocation2 + $0x30] sm:$0xff] }
  0x38   :  { %173 = vadd.xlane.f32.xlu1 %v172_v36  ;;  %v156_v31 = vmul.f32 %v762_v16, %v988_v23  ;;  %v765_v33 = vunpack.c.l.bf16 %v788_v27  ;;  %v202_v34 = vsel %vm100_vm0, %v164_v29, 0.0  ;;  %v233_v36 = vmul.f32 %v781_v32, %v958_v1  ;;  %v626_v16 = vld [vmem:[#allocation2 + $0x20] sm:$0xff] }
  0x39   :  { %v246_v25 = vsel %vm100_vm0, %v224_v20, 0.0  ;;  %v110_v30 = vsel %vm100_vm0, %v87_v24, 0.0  ;;  %v96_v40 = vmul.f32 %v781_v32, %v970_v11  ;;  %v165_v42 = vmul.f32 %v781_v32, %v988_v23  ;;  %v629_v20 = vld [vmem:[#allocation2 + $0x38] sm:$0xff] }
  0x3a   :  { %170 = vadd.xlane.f32.xlu0 %v169_v37  ;;  %v178_v35 = vsel %vm100_vm0, %v156_v31, 0.0  ;;  %v225_v37 = vmul.f32 %v765_v33, %v958_v1  ;;  %v273_v38 = vsel %vm100_vm0, %v233_v36, 0.0  ;;  %v88_v41 = vmul.f32 %v765_v33, %v970_v11 }
  0x3b   :  { %v157_v46 = vmul.f32 %v765_v33, %v988_v23  ;;  %v205_v48 = vsel %vm100_vm0, %v165_v42, 0.0  ;;  %v908_v10 = vmov 0.0|0.0   ;;  %v804_v21 = vpack.c.bf16 %v629_v20, %v628_v19  ;;  %v646_v42 = vld [vmem:[#allocation2 + $0xc0] sm:$0xff] }
  0x3c   :  { %197 = vadd.xlane.f32.xlu1 %v196_v43  ;;  %v249_v39 = vsel %vm100_vm0, %v225_v37, 0.0  ;;  %v782_v43 = vunpack.c.h.bf16 %v792_v26  ;;  %794 = vmatprep.subr.bf16.mxu0 %v908_v10  ;;  %v909_v36 = vmov 0.0   ;;  %vm441_vm7 = vcmask 720512  }
  0x3d   :  { %v181_v49 = vsel %vm100_vm0, %v157_v46, 0.0  ;;  %796 = vmatpush1.bf16.msra.mxu0 %v795_v9  ;;  %vm336_vm8 = vcmask 261312   ;;  %vm448_vm9 = vcmask 786112   ;;  %vm343_vm10 = vcmask 326912  }
  0x3e   :  { %194 = vadd.xlane.f32.xlu0 %v193_v44  ;;  %v137_v44 = vsel %vm100_vm0, %v96_v40, 0.0  ;;  %v234_v50 = vmul.f32 %v782_v43, %v958_v1  ;;  %v97_v54 = vmul.f32 %v782_v43, %v970_v11  ;;  %v166_v63 = vmul.f32 %v782_v43, %v988_v23  ;;  %797 = vmatprep.subr.bf16.mxu0 %v908_v10 }
  0x3f   :  { %vm455_vm11 = vcmask 851712   ;;  %vm350_vm12 = vcmask 392512   ;;  %vm462_vm13 = vcmask 917312   ;;  %vm357_vm14 = vcmask 458112  }
  0x40   :  { %268 = vadd.xlane.f32.xlu1 %v267_v45  ;;  %v113_v45 = vsel %vm100_vm0, %v88_v41, 0.0  ;;  %v276_v52 = vsel %vm100_vm0, %v234_v50, 0.0  ;;  %v295_v41 = vstv %s288_s27  ;;  %vm469_vm15 = vcmask 982912  }
  0x42   :  { %244 = vadd.xlane.f32.xlu0 %v243_v47  ;;  %v766_v47 = vunpack.c.h.bf16 %v788_v27 }
  0x44   :  { %132 = vadd.xlane.f32.xlu1 %v131_v13  ;;  %v226_v51 = vmul.f32 %v766_v47, %v958_v1  ;;  %v89_v58 = vmul.f32 %v766_v47, %v970_v11  ;;  %v158_v0 = vmul.f32 %v766_v47, %v988_v23  ;;  %v140_v1 = vsel %vm100_vm0, %v97_v54, 0.0  ;;  %v624_v11 = vld [vmem:[#allocation2 + $0x10] sm:$0xff]  ;;  %v625_v13 = vld [vmem:[#allocation2 + $0x18] sm:$0xff] }
  0x45   :  { %v798_v23 = vpack.c.bf16 %v625_v13, %v624_v11 }
  0x46   :  { %108 = vadd.xlane.f32.xlu0 %v107_v14  ;;  %v252_v53 = vsel %vm100_vm0, %v226_v51, 0.0  ;;  %v116_v4 = vsel %vm100_vm0, %v89_v58, 0.0  ;;  %v208_v14 = vsel %vm100_vm0, %v166_v63, 0.0  ;;  %v184_v15 = vsel %vm100_vm0, %v158_v0, 0.0 }
  0x47   :  { %799 = vmatpush1.bf16.msra.mxu0 %v798_v23  ;;  %vm364_vm0 = vcmask 523712  }
  0x48   :  { %200 = vadd.xlane.f32.xlu1 %v199_v17  ;;  %v627_v17 = vld [vmem:[#allocation2 + $0x28] sm:$0xff]  ;;  %800 = vmatprep.subr.bf16.mxu0 %v908_v10 }
  0x4a   :  { %176 = vadd.xlane.f32.xlu0 %v175_v18  ;;  %v801_v18 = vpack.c.bf16 %v627_v17, %v626_v16 }
  0x4c   :  { %271 = vadd.xlane.f32.xlu1 %v270_v22  ;;  %802 = vmatpush1.bf16.msra.mxu0 %v801_v18  ;;  %v630_v22 = vld [vmem:[#allocation2 + $0x40] sm:$0xff] }
  0x4d   :  { %803 = vmatprep.subr.bf16.mxu0 %v908_v10 }
  0x4e   :  { %247 = vadd.xlane.f32.xlu0 %v246_v25  ;;  %v631_v25 = vld [vmem:[#allocation2 + $0x48] sm:$0xff] }
  0x4f   :  { %v807_v24 = vpack.c.bf16 %v631_v25, %v630_v22 }
  0x50   :  { %135 = vadd.xlane.f32.xlu1 %v134_v28  ;;  %805 = vmatpush1.bf16.msra.mxu0 %v804_v21 }
  0x51   :  { %806 = vmatprep.subr.bf16.mxu0 %v908_v10 }
  0x52   :  { %111 = vadd.xlane.f32.xlu0 %v110_v30  ;;  %v285_v30 = vlaneseq }
  0x54   :  { %203 = vadd.xlane.f32.xlu1 %v202_v34  ;;  %808 = vmatpush1.bf16.msra.mxu0 %v807_v24  ;;  %v1137_v32 = vand.u32 127, %v285_v30  ;;  %v644_v34 = vld [vmem:[#allocation2 + $0xb0] sm:$0xff] }
  0x55   :  { %809 = vmatprep.subr.bf16.mxu0 %v908_v10 }
  0x56   :  { %179 = vadd.xlane.f32.xlu0 %v178_v35  ;;  %vm291_vm1 = vcmp.eq.s32.totalorder %v1137_v32, 2  ;;  %v645_v35 = vld [vmem:[#allocation2 + $0xb8] sm:$0xff]  ;;  %vm289_vm2 = vcmp.eq.s32.totalorder %v1137_v32, 1  ;;  %vm287_vm3 = vcmp.eq.s32.totalorder %v1137_v32, 0  ;;  %v317_v46 = vadd.s32 4294967288, %v1137_v32 }
  0x57   :  { %v292_v37 = vsel %vm291_vm1, -1e+30, %v909_v36  ;;  %v429_v9 = vadd.s32 4294967224, %v1137_v32  ;;  %v324_v25 = vadd.s32 4294967280, %v1137_v32  ;;  %vm405_vm1 = vcmask 1041409  }
  0x58   :  { %274 = vadd.xlane.f32.xlu1 %v273_v38  ;;  %v293_v38 = vstv %s753_s0 }
  0x59   :  { %v294_v40 = vsel %vm289_vm2, %v293_v38, %v292_v37  ;;  %vm476_vm2 = vcmask 1048512  }
  0x5a   :  { %250 = vadd.xlane.f32.xlu0 %v249_v39  ;;  %v828_v39 = vpack.c.bf16 %v645_v35, %v644_v34  ;;  %v296_v43 = vsel %vm287_vm3, %v295_v41, %v294_v40  ;;  %vm619_vm3 = vcmask 523264  }
  0x5c   :  { %138 = vadd.xlane.f32.xlu1 %v137_v44  ;;  %v1144_v44 = vshrl.u32 %v285_v30, 7 }
  0x5e   :  { %114 = vadd.xlane.f32.xlu0 %v113_v45  ;;  %v315_v45 = vsub.s32 %v1137_v32, %v1144_v44  ;;  %v320_v51 = vsub.s32 %v317_v46, %v1144_v44  ;;  %v432_v16 = vsub.s32 %v429_v9, %v1144_v44 }
  0x60   :  { %206 = vadd.xlane.f32.xlu1 %v205_v48 }
  0x62   :  { %182 = vadd.xlane.f32.xlu0 %v181_v49 }
  0x64   :  { %277 = vadd.xlane.f32.xlu1 %v276_v52 }
  0x66   :  { %253 = vadd.xlane.f32.xlu0 %v252_v53 }
  0x68   :  { %141 = vadd.xlane.f32.xlu1 %v140_v1 }
  0x6a   :  { %117 = vadd.xlane.f32.xlu0 %v116_v4 }
  0x6c   :  { %209 = vadd.xlane.f32.xlu1 %v208_v14 }
  0x6e   :  { %185 = vadd.xlane.f32.xlu0 %v184_v15 }
  0x70   :  { %280 = vadd.xlane.f32.xlu1 %v1026_v55  ;;  %v632_v55 = vld [vmem:[#allocation2 + $0x50] sm:$0xff] }
  0x72   :  { %256 = vadd.xlane.f32.xlu0 %v1029_v56  ;;  %v633_v56 = vld [vmem:[#allocation2 + $0x58] sm:$0xff] }
  0x73   :  { %v810_v26 = vpack.c.bf16 %v633_v56, %v632_v55 }
  0x74   :  { %144 = vadd.xlane.f32.xlu1 %v1032_v57  ;;  %v634_v57 = vld [vmem:[#allocation2 + $0x60] sm:$0xff] }
  0x75   :  { %811 = vmatpush1.bf16.msra.mxu0 %v810_v26 }
  0x76   :  { %120 = vadd.xlane.f32.xlu0 %v1035_v59  ;;  %v635_v59 = vld [vmem:[#allocation2 + $0x68] sm:$0xff]  ;;  %812 = vmatprep.subr.bf16.mxu0 %v908_v10 }
  0x77   :  { %v813_v27 = vpack.c.bf16 %v635_v59, %v634_v57  ;;  %v327_v59 = vsub.s32 %v324_v25, %v1144_v44 }
  0x78   :  { %212 = vadd.xlane.f32.xlu1 %v1038_v60  ;;  %v636_v60 = vld [vmem:[#allocation2 + $0x70] sm:$0xff] }
  0x79   :  { %814 = vmatpush1.bf16.msra.mxu0 %v813_v27 }
  0x7a   :  { %188 = vadd.xlane.f32.xlu0 %v1041_v61  ;;  %v637_v61 = vld [vmem:[#allocation2 + $0x78] sm:$0xff]  ;;  %815 = vmatprep.subr.bf16.mxu0 %v908_v10 }
  0x7b   :  { %v816_v28 = vpack.c.bf16 %v637_v61, %v636_v60 }
  0x7c   :  { %283 = vadd.xlane.f32.xlu1 %v1044_v62  ;;  %v638_v62 = vld [vmem:[#allocation2 + $0x80] sm:$0xff] }
  0x7d   :  { %817 = vmatpush1.bf16.msra.mxu0 %v816_v28 }
  0x7e   :  { %259 = vadd.xlane.f32.xlu0 %v1052_v5  ;;  %v639_v5 = vld [vmem:[#allocation2 + $0x88] sm:$0xff]  ;;  %818 = vmatprep.subr.bf16.mxu0 %v908_v10 }
  0x7f   :  { %v819_v29 = vpack.c.bf16 %v639_v5, %v638_v62  ;;  %v436_v5 = vadd.s32 4294967216, %v1137_v32 }
  0x80   :  { %147 = vadd.xlane.f32.xlu1 %v1055_v6  ;;  %v640_v6 = vld [vmem:[#allocation2 + $0x90] sm:$0xff] }
  0x81   :  { %820 = vmatpush1.bf16.msra.mxu0 %v819_v29 }
  0x82   :  { %123 = vadd.xlane.f32.xlu0 %v1058_v7  ;;  %821 = vmatprep.subr.bf16.mxu0 %v908_v10  ;;  %v641_v7 = vld [vmem:[#allocation2 + $0x98] sm:$0xff] }
  0x83   :  { %v822_v31 = vpack.c.bf16 %v641_v7, %v640_v6 }
  0x84   :  { %215 = vadd.xlane.f32.xlu1 %v1061_v8  ;;  %v642_v8 = vld [vmem:[#allocation2 + $0xa0] sm:$0xff] }
  0x85   :  { %823 = vmatpush1.bf16.msra.mxu0 %v822_v31 }
  0x86   :  { %191 = vadd.xlane.f32.xlu0 %v1065_v12  ;;  %824 = vmatprep.subr.bf16.mxu0 %v908_v10  ;;  %v643_v12 = vld [vmem:[#allocation2 + $0xa8] sm:$0xff] }
  0x87   :  { %v825_v33 = vpack.c.bf16 %v643_v12, %v642_v8  ;;  %v439_v12 = vsub.s32 %v436_v5, %v1144_v44 }
  0x89   :  { %826 = vmatpush1.bf16.msra.mxu0 %v825_v33  ;;  %v331_v33 = vadd.s32 4294967272, %v1137_v32 }
  0x8a   :  { %827 = vmatprep.subr.bf16.mxu0 %v908_v10  ;;  %v424_v10 = vadd.s32 4294967232, %v1137_v32 }
  0x8b   :  { %v334_v40 = vsub.s32 %v331_v33, %v1144_v44 }
  0x8c   :  { %v427_v17 = vsub.s32 %v424_v10, %v1144_v44 }
  0x8d   :  { %829 = vmatpush1.bf16.msra.mxu0 %v828_v39 }
  0x8e   :  { %699 = vmatprep.subr.mxu0 %v909_v36 }
  0x91   :  { %700 = vmatpush1.msra.mxu0 %v646_v42 }
  0x9c   :  { %616 = vrot.lane.b32.xlu0 %v296_v43, %s910_s3 }
  0xb5   :  { %v263_v47 = vpop.xlane.xlu1 %262 }
  0xb6   :  { %v577_v49 = vrot.slane %v263_v47, %v315_v45 }
  0xb7   :  { %v239_v48 = vpop.xlane.xlu0 %238 }
  0xb8   :  { %v538_v50 = vrot.slane %v239_v48, %v315_v45  ;;  %v443_v48 = vadd.s32 4294967208, %v1137_v32 }
  0xb9   :  { %v266_v52 = vpop.xlane.xlu1 %265 }
  0xba   :  { %v581_v54 = vrot.slane %v266_v52, %v320_v51 }
  0xbb   :  { %v242_v53 = vpop.xlane.xlu0 %241 }
  0xbc   :  { %v542_v58 = vrot.slane %v242_v53, %v320_v51  ;;  %v582_v63 = vsel %vm322_vm4, %v581_v54, %v577_v49 }
  0xbd   :  { %v106_v2 = vpop.xlane.xlu1 %105 }
  0xbe   :  { %v543_v0 = vsel %vm322_vm4, %v542_v58, %v538_v50  ;;  %v321_v1 = vrot.slane %v106_v2, %v320_v51  ;;  %v446_v58 = vsub.s32 %v443_v48, %v1144_v44 }
  0xbf   :  { %v103_v3 = vpop.xlane.xlu0 %102 }
  0xc0   :  { %v316_v4 = vrot.slane %v103_v3, %v315_v45 }
  0xc1   :  { %v130_v13 = vpop.xlane.xlu1 %129 }
  0xc2   :  { %v323_v11 = vsel %vm322_vm4, %v321_v1, %v316_v4  ;;  %v373_v15 = vrot.slane %v130_v13, %v320_v51 }
  0xc3   :  { %v127_v14 = vpop.xlane.xlu0 %126 }
  0xc4   :  { %v369_v23 = vrot.slane %v127_v14, %v315_v45 }
  0xc5   :  { %v174_v19 = vpop.xlane.xlu1 %173 }
  0xc6   :  { %v374_v18 = vsel %vm322_vm4, %v373_v15, %v369_v23  ;;  %v433_v21 = vrot.slane %v174_v19, %v432_v16  ;;  %vm647_vm4 = vcmask 588800  }
  0xc7   :  { %v171_v20 = vpop.xlane.xlu0 %170 }
  0xc8   :  { %v428_v22 = vrot.slane %v171_v20, %v427_v17 }
  0xc9   :  { %v198_v55 = vpop.xlane.xlu1 %197 }
  0xca   :  { %v435_v24 = vsel %vm434_vm5, %v433_v21, %v428_v22  ;;  %v485_v26 = vrot.slane %v198_v55, %v432_v16  ;;  %v345_v55 = vadd.s32 4294967256, %v1137_v32 }
  0xcb   :  { %v195_v56 = vpop.xlane.xlu0 %194 }
  0xcc   :  { %v481_v57 = vrot.slane %v195_v56, %v427_v17  ;;  %v450_v17 = vadd.s32 4294967200, %v1137_v32 }
  0xcd   :  { %v269_v60 = vpop.xlane.xlu1 %268 }
  0xce   :  { %v486_v27 = vsel %vm434_vm5, %v485_v26, %v481_v57  ;;  %v586_v28 = vrot.slane %v269_v60, %v327_v59  ;;  %vm721_vm5 = vcmask 1041408  }
  0xcf   :  { %v245_v61 = vpop.xlane.xlu0 %244 }
  0xd0   :  { %v547_v62 = vrot.slane %v245_v61, %v327_v59  ;;  %v587_v29 = vsel %vm329_vm6, %v586_v28, %v582_v63  ;;  %v338_v63 = vadd.s32 4294967264, %v1137_v32  ;;  %v348_v61 = vsub.s32 %v345_v55, %v1144_v44 }
  0xd1   :  { %v133_v6 = vpop.xlane.xlu1 %132 }
  0xd2   :  { %v548_v30 = vsel %vm329_vm6, %v547_v62, %v543_v0  ;;  %v378_v31 = vrot.slane %v133_v6, %v327_v59  ;;  %v341_v10 = vsub.s32 %v338_v63, %v1144_v44 }
  0xd3   :  { %v109_v7 = vpop.xlane.xlu0 %108 }
  0xd4   :  { %v328_v8 = vrot.slane %v109_v7, %v327_v59  ;;  %v379_v34 = vsel %vm329_vm6, %v378_v31, %v374_v18  ;;  %v457_v7 = vadd.s32 4294967192, %v1137_v32 }
  0xd5   :  { %v201_v36 = vpop.xlane.xlu1 %200 }
  0xd6   :  { %v330_v35 = vsel %vm329_vm6, %v328_v8, %v323_v11  ;;  %v490_v38 = vrot.slane %v201_v36, %v439_v12  ;;  %v460_v36 = vsub.s32 %v457_v7, %v1144_v44 }
  0xd7   :  { %v177_v37 = vpop.xlane.xlu0 %176 }
  0xd8   :  { %v440_v39 = vrot.slane %v177_v37, %v439_v12  ;;  %v491_v41 = vsel %vm441_vm7, %v490_v38, %v486_v27  ;;  %v352_v37 = vadd.s32 4294967248, %v1137_v32 }
  0xd9   :  { %v272_v43 = vpop.xlane.xlu1 %271 }
  0xda   :  { %v442_v42 = vsel %vm441_vm7, %v440_v39, %v435_v24  ;;  %v591_v46 = vrot.slane %v272_v43, %v334_v40  ;;  %v453_v24 = vsub.s32 %v450_v17, %v1144_v44 }
  0xdb   :  { %v248_v45 = vpop.xlane.xlu0 %247 }
  0xdc   :  { %v552_v47 = vrot.slane %v248_v45, %v334_v40  ;;  %v592_v49 = vsel %vm336_vm8, %v591_v46, %v587_v29  ;;  %v355_v45 = vsub.s32 %v352_v37, %v1144_v44 }
  0xdd   :  { %v136_v51 = vpop.xlane.xlu1 %135 }
  0xde   :  { %v553_v50 = vsel %vm336_vm8, %v552_v47, %v548_v30  ;;  %v383_v53 = vrot.slane %v136_v51, %v334_v40 }
  0xdf   :  { %v112_v52 = vpop.xlane.xlu0 %111 }
  0xe0   :  { %v335_v54 = vrot.slane %v112_v52, %v334_v40  ;;  %v384_v0 = vsel %vm336_vm8, %v383_v53, %v379_v34  ;;  %v464_v52 = vadd.s32 4294967184, %v1137_v32 }
  0xe1   :  { %v204_v3 = vpop.xlane.xlu1 %203 }
  0xe2   :  { %v337_v2 = vsel %vm336_vm8, %v335_v54, %v330_v35  ;;  %v495_v4 = vrot.slane %v204_v3, %v446_v58  ;;  %v467_v3 = vsub.s32 %v464_v52, %v1144_v44 }
  0xe3   :  { %v180_v1 = vpop.xlane.xlu0 %179 }
  0xe4   :  { %v447_v9 = vrot.slane %v180_v1, %v446_v58  ;;  %v496_v11 = vsel %vm448_vm9, %v495_v4, %v491_v41  ;;  %v359_v1 = vadd.s32 4294967240, %v1137_v32 }
  0xe5   :  { %v275_v14 = vpop.xlane.xlu1 %274 }
  0xe6   :  { %v449_v13 = vsel %vm448_vm9, %v447_v9, %v442_v42  ;;  %v596_v23 = vrot.slane %v275_v14, %v341_v10 }
  0xe7   :  { %v251_v15 = vpop.xlane.xlu0 %250 }
  0xe8   :  { %v557_v16 = vrot.slane %v251_v15, %v341_v10  ;;  %v597_v18 = vsel %vm343_vm10, %v596_v23, %v592_v49  ;;  %v362_v15 = vsub.s32 %v359_v1, %v1144_v44 }
  0xe9   :  { %v139_v20 = vpop.xlane.xlu1 %138 }
  0xea   :  { %v558_v19 = vsel %vm343_vm10, %v557_v16, %v553_v50  ;;  %v388_v22 = vrot.slane %v139_v20, %v341_v10 }
  0xeb   :  { %v115_v21 = vpop.xlane.xlu0 %114 }
  0xec   :  { %v342_v25 = vrot.slane %v115_v21, %v341_v10  ;;  %v389_v56 = vsel %vm343_vm10, %v388_v22, %v384_v0  ;;  %v471_v21 = vadd.s32 4294967176, %v1137_v32 }
  0xed   :  { %v207_v57 = vpop.xlane.xlu1 %206 }
  0xee   :  { %v344_v26 = vsel %vm343_vm10, %v342_v25, %v337_v2  ;;  %v500_v27 = vrot.slane %v207_v57, %v453_v24 }
  0xef   :  { %v183_v59 = vpop.xlane.xlu0 %182 }
  0xf0   :  { %v454_v60 = vrot.slane %v183_v59, %v453_v24  ;;  %v501_v28 = vsel %vm455_vm11, %v500_v27, %v496_v11  ;;  %v474_v59 = vsub.s32 %v471_v21, %v1144_v44 }
  0xf1   :  { %v278_v5 = vpop.xlane.xlu1 %277 }
  0xf2   :  { %v456_v62 = vsel %vm455_vm11, %v454_v60, %v449_v13  ;;  %v601_v30 = vrot.slane %v278_v5, %v348_v61 }
  0xf3   :  { %v254_v29 = vpop.xlane.xlu0 %253 }
  0xf4   :  { %v562_v6 = vrot.slane %v254_v29, %v348_v61  ;;  %v602_v31 = vsel %vm350_vm12, %v601_v30, %v597_v18 }
  0xf5   :  { %v142_v12 = vpop.xlane.xlu1 %141 }
  0xf6   :  { %v563_v8 = vsel %vm350_vm12, %v562_v6, %v558_v19  ;;  %v393_v34 = vrot.slane %v142_v12, %v348_v61 }
  0xf7   :  { %v118_v33 = vpop.xlane.xlu0 %117 }
  0xf8   :  { %v349_v35 = vrot.slane %v118_v33, %v348_v61  ;;  %v394_v38 = vsel %vm350_vm12, %v393_v34, %v389_v56 }
  0xf9   :  { %v210_v40 = vpop.xlane.xlu1 %209 }
  0xfa   :  { %v351_v39 = vsel %vm350_vm12, %v349_v35, %v344_v26  ;;  %v505_v42 = vrot.slane %v210_v40, %v460_v36 }
  0xfb   :  { %v186_v41 = vpop.xlane.xlu0 %185 }
  0xfc   :  { %v461_v43 = vrot.slane %v186_v41, %v460_v36  ;;  %v506_v46 = vsel %vm462_vm13, %v505_v42, %v501_v28 }
  0xfd   :  { %v281_v48 = vpop.xlane.xlu1 %280 }
  0xfe   :  { %v463_v47 = vsel %vm462_vm13, %v461_v43, %v456_v62  ;;  %v606_v50 = vrot.slane %v281_v48, %v355_v45 }
  0xff   :  { %v257_v49 = vpop.xlane.xlu0 %256 }
 0x100   :  { %v567_v51 = vrot.slane %v257_v49, %v355_v45  ;;  %v607_v53 = vsel %vm357_vm14, %v606_v50, %v602_v31 }
 0x101   :  { %v145_v58 = vpop.xlane.xlu1 %144 }
 0x102   :  { %v568_v54 = vsel %vm357_vm14, %v567_v51, %v563_v8  ;;  %v398_v0 = vrot.slane %v145_v58, %v355_v45 }
 0x103   :  { %v121_v63 = vpop.xlane.xlu0 %120 }
 0x104   :  { %v356_v2 = vrot.slane %v121_v63, %v355_v45  ;;  %v399_v4 = vsel %vm357_vm14, %v398_v0, %v394_v38 }
 0x105   :  { %v213_v10 = vpop.xlane.xlu1 %212 }
 0x106   :  { %v358_v9 = vsel %vm357_vm14, %v356_v2, %v351_v39  ;;  %v510_v13 = vrot.slane %v213_v10, %v467_v3 }
 0x107   :  { %v189_v11 = vpop.xlane.xlu0 %188 }
 0x108   :  { %v468_v14 = vrot.slane %v189_v11, %v467_v3  ;;  %v511_v23 = vsel %vm469_vm15, %v510_v13, %v506_v46 }
 0x109   :  { %v284_v17 = vpop.xlane.xlu1 %283 }
 0x10a   :  { %v470_v16 = vsel %vm469_vm15, %v468_v14, %v463_v47  ;;  %v611_v19 = vrot.slane %v284_v17, %v362_v15 }
 0x10b   :  { %v260_v18 = vpop.xlane.xlu0 %259 }
 0x10c   :  { %v572_v20 = vrot.slane %v260_v18, %v362_v15  ;;  %v612_v25 = vsel %vm364_vm0, %v611_v19, %v607_v53 }
 0x10d   :  { %v148_v24 = vpop.xlane.xlu1 %147 }
 0x10e   :  { %v573_v22 = vsel %vm364_vm0, %v572_v20, %v568_v54  ;;  %v403_v26 = vrot.slane %v148_v24, %v362_v15 }
 0x10f   :  { %v124_v55 = vpop.xlane.xlu0 %123  ;;  %v613_v56 = vsel %vm405_vm1, %v612_v25, %v573_v22 }
 0x110   :  { %v363_v57 = vrot.slane %v124_v55, %v362_v15  ;;  %v404_v27 = vsel %vm364_vm0, %v403_v26, %v399_v4 }
 0x111   :  { %v216_v61 = vpop.xlane.xlu1 %215 }
 0x112   :  { %v365_v60 = vsel %vm364_vm0, %v363_v57, %v358_v9  ;;  %v515_v5 = vrot.slane %v216_v61, %v474_v59 }
 0x113   :  { %v192_v28 = vpop.xlane.xlu0 %191  ;;  %v406_v62 = vsel %vm405_vm1, %v404_v27, %v365_v60 }
 0x114   :  { %v475_v32 = vrot.slane %v192_v28, %v474_v59  ;;  %v516_v29 = vsel %vm476_vm2, %v515_v5, %v511_v23 }
 0x116   :  { %v477_v30 = vsel %vm476_vm2, %v475_v32, %v470_v16 }
 0x117   :  { %v617_v6 = vpop.permute.xlu0 %616  ;;  %v517_v7 = vsel %vm405_vm1, %v516_v29, %v477_v30 }
 0x118   :  { %v621_v31 = vsel %vm619_vm3, %v613_v56, %v617_v6  ;;  %v620_v8 = vsel %vm619_vm3, %v406_v62, %v517_v7 }
 0x119   :  { %754 = vmatprep.mubr.msk.f32.mxu0 %vm647_vm4, %v621_v31 }
 0x11a   :  { %716 = vmatmul.mubr.f32.vlgmr.msra.gmra.mrb[0].mxu0 %v620_v8 }
 0x1ed   :  { %v717_v44 = vpop.f32.mrb[0].mxu0 }
 0x1ee   :  { %v719_v12 = vpop.f32.mrb[1].mxu0  ;;  %v722_v33 = vsel %vm721_vm5, %v717_v44, -inf }
 0x1ef   :  { %723 = vmax.xlane.f32.xlu1 %v722_v33 }
 0x27c   :  { %v724_v34 = vpop.xlane.xlu1 %723 }
 0x27d   :  { %v725_v35 = vsub.f32 %v717_v44, %v724_v34 }
 0x27f   :  { %v726_v36 = vmul.f32 1.442695, %v725_v35 }
 0x281   :  { %838 = vpow2.f32 %v726_v36 }
 0x28b   :  { %v839_v37 = vpop.eup %838 }
 0x28c   :  { %v728_v38 = vsel %vm721_vm5, %v839_v37, 0.0 }
 0x28d   :  { %729 = vadd.xlane.f32.xlu1 %v728_v38 }
 0x31a   :  { %v730_v39 = vpop.xlane.xlu1 %729 }
 0x31b   :  { %840 = vrcp.f32 %v730_v39 }
 0x325   :  { %v841_v40 = vpop.eup %840 }
 0x326   :  { %v732_v41 = vmul.f32 %v841_v40, %v839_v37 }
 0x328   :  { %733 = vst [vmem:[#allocation7] sm:$0x3] %v732_v41 }
 0x329   :  { %887 = shalt.err (!%p884_p3)
}
 0x32a   :  { %s888_s7 = scalar_lea.hbm %s1201_s4, 32 }
 0x32b   :  { %p889_p4 = scmp.ne.s32.totalorder %s1201_s4, %s888_s7  ;;  %p892_p5 = scmp.lt.u32.totalorder %s888_s7, %s1201_s4 }
 0x32d   :  { %p894_p6 = pnand %p892_p5, %p889_p4 }
 0x32f   :  { %897 = shalt.err (!%p894_p6)
}
 0x330   :  { %743 = dma.vmem_to_hbm [thread:$0]  %s741_s29, 32, %s1201_s4, [#allocation4]  }
 0x331   :  { %902 = dma.done.wait [#allocation4], 32  }
 0x332   :  { %903 = vsyncadd [#allocation4], 4294967264 }
 0x333   :  { %747 = vsyncpa [#allocation3], 1 }
 0x334   :  { %748 = vsyncpa [#allocation4], 1 }
 0x335   :  { %749 = vsyncpa [#allocation5], 1 }

</bundles_post_ra>
